<compile_context>
chip_gen: v5e
topology: v5e:2x2
jax: 0.10.0
libtpu: 0.0.40
codegen_flags: <defaults>
</compile_context>

<pallas_src>
import functools

import jax
import jax.numpy as jnp
from jax.experimental import pallas as pl
from jax.experimental.pallas import tpu as pltpu


# ----------------------------------------------------------------------------
# Fused kernel: 1x1 conv (+bias, ReLU)  ->  feat store  ->  GAP (VMEM scratch)
#               -> ClassBlock head at the last spatial step
# ----------------------------------------------------------------------------
def conv_gap_head_kernel(x_ref, wt_ref, b_ref, bn1s_ref, bn1b_ref, w1_ref,
                         bn2s_ref, bn2b_ref, wc_ref, feat_ref, y_ref,
                         pool_ref, *, inv_hw, hw_valid, hw_tile, needs_mask):
    """Grid: (N, S) -- batch ("parallel") x spatial tiles ("arbitrary").

    x_ref    : (1, C_in, hw_tile)   NCHW input, spatial flattened (no transpose)
    wt_ref   : (C_out, C_in)        conv weight, transposed
    b_ref    : (C_out, 1)           conv bias (column)
    bn1s/b   : (1, C_out)           folded BatchNorm1d(input_dim) scale/shift
    w1_ref   : (C_out, 512)         Linear(input_dim -> 512, bias=False)
    bn2s/b   : (1, 512)             folded BatchNorm1d(512) scale/shift
    wc_ref   : (512, NC_pad)        classifier weight, padded lane-dense
    feat_ref : (1, C_out, hw_tile)  ReLU feature-map tile (NCHW layout)
    y_ref    : (1, 1, NC_pad)       classifier logits for this batch element
    pool_ref : (C_out, 1) VMEM      running GAP sum (scratch, per batch element)
    """
    s = pl.program_id(1)
    n_s = pl.num_programs(1)

    x = x_ref[0]                          # (C_in, hw_tile)
    wt = wt_ref[...]                      # (C_out, C_in)
    c_in = wt.shape[1]
    c_out = wt.shape[0]

    # K = C_in is tiny: unrolled VPU FMAs (outer-product broadcasts), not MXU.
    acc = wt[:, 0:1] * x[0:1, :]
    for k in range(1, c_in):
        acc = acc + wt[:, k:k + 1] * x[k:k + 1, :]
    acc = jnp.maximum(acc + b_ref[...], 0.0)          # (C_out, hw_tile) f32
    feat_ref[0] = acc.astype(feat_ref.dtype)          # lane-dense bulk store

    # ---- Global-average-pool accumulation into VMEM scratch -----------------
    if needs_mask:
        col = s * hw_tile + jax.lax.broadcasted_iota(jnp.int32, (1, hw_tile), 1)
        acc_sum_src = jnp.where(col < hw_valid, acc, 0.0)
    else:
        acc_sum_src = acc
    tile_sum = jnp.sum(acc_sum_src, axis=-1, keepdims=True)   # (C_out, 1)

    @pl.when(s == 0)
    def _():
        pool_ref[...] = jnp.zeros_like(pool_ref)

    pool_ref[...] = pool_ref[...] + tile_sum

    # ---- ClassBlock head, fused: once per batch element at the last tile ----
    @pl.when(s == n_s - 1)
    def _():
        pooled_col = pool_ref[...] * inv_hw                    # (C_out, 1)
        # Column -> row without a transpose: multiply by identity and reduce
        # over sublanes (tiny 32x32, runs once per batch element).
        rid = jax.lax.broadcasted_iota(jnp.int32, (c_out, c_out), 0)
        cid = jax.lax.broadcasted_iota(jnp.int32, (c_out, c_out), 1)
        eye = (rid == cid).astype(jnp.float32)
        pooled_row = jnp.sum(pooled_col * eye, axis=0, keepdims=True)  # (1, C)

        h = jnp.maximum(pooled_row * bn1s_ref[...] + bn1b_ref[...], 0.0)
        h = jnp.dot(h, w1_ref[...], preferred_element_type=jnp.float32)
        h = h * bn2s_ref[...] + bn2b_ref[...]
        y = jnp.dot(h, wc_ref[...], preferred_element_type=jnp.float32)
        y_ref[0] = y.astype(y_ref.dtype)


# ----------------------------------------------------------------------------
# Wrapper around pallas_call
# ----------------------------------------------------------------------------
def _round_up(x, m):
    return ((x + m - 1) // m) * m


def _choose_tiling(hw, cap=8192, hw_tile=None):
    """Return (hw_tile, hw_pad). hw_tile is a multiple of 128; hw_pad = k*tile."""
    if hw_tile is not None:
        if hw_tile % 128 != 0:
            raise ValueError("hw_tile must be a multiple of 128 "
                             "(lane-dense feature-map stores).")
        return hw_tile, _round_up(hw, hw_tile)
    hw128 = _round_up(hw, 128)
    n_tiles = max(1, -(-hw128 // cap))                 # cdiv
    tile = _round_up(-(-hw128 // n_tiles), 128)
    return tile, tile * n_tiles


def fused_forward(x3, wt, bcol, bn1s, bn1b, w1, bn2s, bn2b, wc_pad, *,
                  hw, hw_tile, feat_dtype):
    """x3: (N, C_in, hw_pad) zero-padded input -> (feat3, y3)."""
    n, c_in, hw_pad = x3.shape
    c_out = wt.shape[0]
    nb = w1.shape[1]
    nc_pad = wc_pad.shape[1]
    assert hw_pad % hw_tile == 0
    s_steps = hw_pad // hw_tile
    needs_mask = hw_pad != hw

    kernel = functools.partial(conv_gap_head_kernel,
                               inv_hw=1.0 / float(hw),
                               hw_valid=hw,
                               hw_tile=hw_tile,
                               needs_mask=needs_mask)

    return pl.pallas_call(
        kernel,
        out_shape=(jax.ShapeDtypeStruct((n, c_out, hw_pad), feat_dtype),
                   jax.ShapeDtypeStruct((n, 1, nc_pad), jnp.float32)),
        grid=(n, s_steps),
        in_specs=[
            pl.BlockSpec((1, c_in, hw_tile), lambda i, s: (i, 0, s)),
            pl.BlockSpec((c_out, c_in), lambda i, s: (0, 0)),
            pl.BlockSpec((c_out, 1), lambda i, s: (0, 0)),
            pl.BlockSpec((1, c_out), lambda i, s: (0, 0)),
            pl.BlockSpec((1, c_out), lambda i, s: (0, 0)),
            pl.BlockSpec((c_out, nb), lambda i, s: (0, 0)),
            pl.BlockSpec((1, nb), lambda i, s: (0, 0)),
            pl.BlockSpec((1, nb), lambda i, s: (0, 0)),
            pl.BlockSpec((nb, nc_pad), lambda i, s: (0, 0)),
        ],
        out_specs=(
            pl.BlockSpec((1, c_out, hw_tile), lambda i, s: (i, 0, s)),
            pl.BlockSpec((1, 1, nc_pad), lambda i, s: (i, 0, 0)),
        ),
        scratch_shapes=[pltpu.VMEM((c_out, 1), jnp.float32)],
        compiler_params=pltpu.CompilerParams(
            dimension_semantics=("parallel", "arbitrary"),
            vmem_limit_bytes=32 * 1024 * 1024),
    )(x3, wt, bcol, bn1s, bn1b, w1, bn2s, bn2b, wc_pad)


# ----------------------------------------------------------------------------
# Single_Teacher (JAX/Pallas)
# ----------------------------------------------------------------------------
class SingleTeacherPallas:
    def __init__(self, num_classes, c_in=4, in_planes=32, num_bottleneck=512,
                 hw_tile=None, hw_tile_cap=8192, feat_dtype=jnp.float32,
                 key=None):
        if key is None:
            key = jax.random.PRNGKey(0)
        k_conv, k_w1, k_wc = jax.random.split(key, 3)
        self.num_classes = num_classes
        self.in_planes = in_planes
        self.num_bottleneck = num_bottleneck
        self.hw_tile = hw_tile
        self.hw_tile_cap = hw_tile_cap
        self.feat_dtype = feat_dtype
        eps = 1e-5

        # Backbone stand-in 1x1 conv. kaiming_normal_(mode='fan_in'), fan_in=c_in
        conv_std = (2.0 / c_in) ** 0.5
        self.conv_w = conv_std * jax.random.normal(
            k_conv, (c_in, in_planes), jnp.float32)
        self.conv_b = jnp.zeros((in_planes,), jnp.float32)
        self.wt = jnp.transpose(self.conv_w)                 # (C_out, C_in)
        self.bcol = self.conv_b.reshape(in_planes, 1)        # (C_out, 1)

        # ClassBlock.add_block — BatchNorm1d layers (inference mode), folded
        # once to per-channel scale/shift (weight=1, bias=0, stats (0,1)).
        bn1_gamma = jnp.ones((in_planes,), jnp.float32)
        bn1_beta = jnp.zeros((in_planes,), jnp.float32)
        bn1_mean = jnp.zeros((in_planes,), jnp.float32)
        bn1_var = jnp.ones((in_planes,), jnp.float32)
        s1 = bn1_gamma / jnp.sqrt(bn1_var + eps)
        self.bn1_scale = s1[None, :]
        self.bn1_shift = (bn1_beta - bn1_mean * s1)[None, :]

        # Linear(in_planes -> num_bottleneck, bias=False),
        # kaiming_normal_(mode='fan_out') -> std = sqrt(2 / out_features)
        w1_std = (2.0 / num_bottleneck) ** 0.5
        self.w1 = w1_std * jax.random.normal(
            k_w1, (in_planes, num_bottleneck), jnp.float32)

        bn2_gamma = jnp.ones((num_bottleneck,), jnp.float32)
        bn2_beta = jnp.zeros((num_bottleneck,), jnp.float32)
        bn2_mean = jnp.zeros((num_bottleneck,), jnp.float32)
        bn2_var = jnp.ones((num_bottleneck,), jnp.float32)
        s2 = bn2_gamma / jnp.sqrt(bn2_var + eps)
        self.bn2_scale = s2[None, :]
        self.bn2_shift = (bn2_beta - bn2_mean * s2)[None, :]

        # classifier: Linear(num_bottleneck -> num_classes, bias=False),
        # normal_(std=0.001). Padded to a lane-dense (mult of 128) width so the
        # logits store is unmasked; sliced back in __call__.
        self.wc = 0.001 * jax.random.normal(
            k_wc, (num_bottleneck, num_classes), jnp.float32)
        self.nc_pad = max(128, _round_up(num_classes, 128))
        self.wc_pad = jnp.zeros(
            (num_bottleneck, self.nc_pad), jnp.float32
        ).at[:, :num_classes].set(self.wc)

    def __call__(self, x):
        # x: (N, C_in, H, W) -- NCHW, matching the PyTorch module input.
        n, c_in, h, w = x.shape
        hw = h * w
        hw_tile, hw_pad = _choose_tiling(hw, cap=self.hw_tile_cap,
                                         hw_tile=self.hw_tile)

        # NCHW -> (N, C_in, H*W) is a free reshape; zero-pad the spatial axis
        # only when H*W is not already aligned to the chosen tile.
        x3 = x.reshape(n, c_in, hw)
        if hw_pad != hw:
            x3 = jnp.pad(x3, ((0, 0), (0, 0), (0, hw_pad - hw)))

        feat3, y3 = fused_forward(
            x3, self.wt, self.bcol, self.bn1_scale, self.bn1_shift, self.w1,
            self.bn2_scale, self.bn2_shift, self.wc_pad,
            hw=hw, hw_tile=hw_tile, feat_dtype=self.feat_dtype)

        if hw_pad != hw:
            feat3 = feat3[:, :, :hw]          # padded spatial tail dropped
        feat = feat3.reshape(n, self.in_planes, h, w)          # NCHW
        y = y3.reshape(n, self.nc_pad)[:, :self.num_classes]
        return feat, y


# ----------------------------------------------------------------------------
# Reference (pure JAX) for sanity checks
# ----------------------------------------------------------------------------
def reference_forward(model, x):
    xt = jnp.transpose(x, (0, 2, 3, 1))                         # NHWC
    feat_nhwc = jnp.maximum(xt @ model.conv_w + model.conv_b, 0.0)
    feat = jnp.transpose(feat_nhwc, (0, 3, 1, 2))               # NCHW
    pooled = jnp.mean(feat, axis=(2, 3))                        # (N, C)
    hid = jnp.maximum(pooled * model.bn1_scale + model.bn1_shift, 0.0) @ model.w1
    hid = hid * model.bn2_scale + model.bn2_shift
    y = hid @ model.wc
    return feat, y


if __name__ == "__main__":
    key = jax.random.PRNGKey(0)
    k_model, k_x1, k_x2, k_x3 = jax.random.split(key, 4)
    num_classes = 16

    model = SingleTeacherPallas(num_classes, c_in=4, in_planes=32,
                                num_bottleneck=512, key=k_model)

    # --- Case 1: lane-aligned spatial extent (single spatial tile) ----------
    x1 = jax.random.normal(k_x1, (2, 4, 16, 16), jnp.float32)   # NCHW
    feat, y = model(x1)
    jax.block_until_ready((feat, y))
    feat_ref, y_ref = reference_forward(model, x1)
    assert feat.shape == (2, 32, 16, 16)
    assert y.shape == (2, num_classes)
    assert jnp.allclose(feat, feat_ref, atol=1e-5, rtol=1e-5)
    assert jnp.allclose(y, y_ref, atol=1e-5, rtol=1e-5)

    # --- Case 2: multi-tile spatial reduction (resident GAP + fused head) ---
    model2 = SingleTeacherPallas(num_classes, hw_tile=2048, key=k_model)
    x2 = jax.random.normal(k_x2, (2, 4, 64, 64), jnp.float32)
    feat2, y2 = model2(x2)
    jax.block_until_ready((feat2, y2))
    feat2_ref, y2_ref = reference_forward(model2, x2)
    assert feat2.shape == (2, 32, 64, 64) and y2.shape == (2, num_classes)
    assert jnp.allclose(feat2, feat2_ref, atol=1e-5, rtol=1e-5)
    assert jnp.allclose(y2, y2_ref, atol=1e-5, rtol=1e-5)

    # --- Case 3: non-128-divisible H*W (padded + masked GAP path) -----------
    x3_in = jax.random.normal(k_x3, (2, 4, 10, 10), jnp.float32)
    feat3o, y3o = model(x3_in)
    jax.block_until_ready((feat3o, y3o))
    feat3_ref, y3_ref = reference_forward(model, x3_in)
    assert feat3o.shape == (2, 32, 10, 10) and y3o.shape == (2, num_classes)
    assert jnp.allclose(feat3o, feat3_ref, atol=1e-5, rtol=1e-5)
    assert jnp.allclose(y3o, y3_ref, atol=1e-5, rtol=1e-5)

    # --- Case 4: bf16 feature-map store (halves the dominant HBM write);
    #             logits stay f32-exact (GAP sums the f32 accumulator). -------
    model_bf16 = SingleTeacherPallas(num_classes, feat_dtype=jnp.bfloat16,
                                     key=k_model)
    feat_b, y_b = model_bf16(x1)
    jax.block_until_ready((feat_b, y_b))
    assert feat_b.dtype == jnp.bfloat16
    assert jnp.allclose(feat_b.astype(jnp.float32), feat_ref,
                        atol=1e-2, rtol=1e-2)
    assert jnp.allclose(y_b, y_ref, atol=1e-5, rtol=1e-5)

    print("KERNEL_OK")
</pallas_src>

<mosaic_0001>
module attributes {stable_mosaic.version = 11 : i64} {
  func.func @conv_gap_head_kernel(%arg0: i32, %arg1: i32, %arg2: memref<1x4x256xf32, #tpu.memory_space<vmem>>, %arg3: memref<32x4xf32, #tpu.memory_space<vmem>>, %arg4: memref<32x1xf32, #tpu.memory_space<vmem>>, %arg5: memref<1x32xf32, #tpu.memory_space<vmem>>, %arg6: memref<1x32xf32, #tpu.memory_space<vmem>>, %arg7: memref<32x512xf32, #tpu.memory_space<vmem>>, %arg8: memref<1x512xf32, #tpu.memory_space<vmem>>, %arg9: memref<1x512xf32, #tpu.memory_space<vmem>>, %arg10: memref<512x128xf32, #tpu.memory_space<vmem>>, %arg11: memref<1x32x256xf32, #tpu.memory_space<vmem>>, %arg12: memref<1x1x128xf32, #tpu.memory_space<vmem>>, %arg13: memref<32x1xf32, #tpu.memory_space<vmem>>) attributes {dimension_semantics = [#tpu.dimension_semantics<parallel>, #tpu.dimension_semantics<arbitrary>], iteration_bounds = array<i64: 2, 1>, scalar_prefetch = 0 : i64, scratch_operands = 1 : i64, tpu.core_type = #tpu.core_type<tc>, window_params = [{transform_indices = @transform_0, window_bounds = array<i64: 1, 4, 256>}, {pipeline_mode = #tpu.pipeline_mode<synchronous>, transform_indices = @transform_1, window_bounds = array<i64: 32, 4>}, {pipeline_mode = #tpu.pipeline_mode<synchronous>, transform_indices = @transform_2, window_bounds = array<i64: 32, 1>}, {pipeline_mode = #tpu.pipeline_mode<synchronous>, transform_indices = @transform_3, window_bounds = array<i64: 1, 32>}, {pipeline_mode = #tpu.pipeline_mode<synchronous>, transform_indices = @transform_4, window_bounds = array<i64: 1, 32>}, {pipeline_mode = #tpu.pipeline_mode<synchronous>, transform_indices = @transform_5, window_bounds = array<i64: 32, 512>}, {pipeline_mode = #tpu.pipeline_mode<synchronous>, transform_indices = @transform_6, window_bounds = array<i64: 1, 512>}, {pipeline_mode = #tpu.pipeline_mode<synchronous>, transform_indices = @transform_7, window_bounds = array<i64: 1, 512>}, {pipeline_mode = #tpu.pipeline_mode<synchronous>, transform_indices = @transform_8, window_bounds = array<i64: 512, 128>}, {transform_indices = @transform_9, window_bounds = array<i64: 1, 32, 256>}, {transform_indices = @transform_10, window_bounds = array<i64: 1, 1, 128>}]} {
    %c0 = arith.constant 0 : index
    %c0_0 = arith.constant 0 : index
    %c0_1 = arith.constant 0 : index
    %0 = vector.load %arg2[%c0, %c0_0, %c0_1] : memref<1x4x256xf32, #tpu.memory_space<vmem>>, vector<1x4x256xf32>
    %1 = vector.shape_cast %0 : vector<1x4x256xf32> to vector<4x256xf32>
    %c0_2 = arith.constant 0 : index
    %c0_3 = arith.constant 0 : index
    %2 = vector.load %arg3[%c0_2, %c0_3] : memref<32x4xf32, #tpu.memory_space<vmem>>, vector<32x4xf32>
    %3 = vector.extract_strided_slice %2 {offsets = [0, 0], sizes = [32, 1], strides = [1, 1]} : vector<32x4xf32> to vector<32x1xf32>
    %4 = vector.extract_strided_slice %1 {offsets = [0, 0], sizes = [1, 256], strides = [1, 1]} : vector<4x256xf32> to vector<1x256xf32>
    %5 = vector.broadcast %3 : vector<32x1xf32> to vector<32x256xf32>
    %6 = vector.broadcast %4 : vector<1x256xf32> to vector<32x256xf32>
    %7 = arith.mulf %5, %6 : vector<32x256xf32>
    %8 = vector.extract_strided_slice %2 {offsets = [0, 1], sizes = [32, 1], strides = [1, 1]} : vector<32x4xf32> to vector<32x1xf32>
    %9 = vector.extract_strided_slice %1 {offsets = [1, 0], sizes = [1, 256], strides = [1, 1]} : vector<4x256xf32> to vector<1x256xf32>
    %10 = vector.broadcast %8 : vector<32x1xf32> to vector<32x256xf32>
    %11 = vector.broadcast %9 : vector<1x256xf32> to vector<32x256xf32>
    %12 = arith.mulf %10, %11 : vector<32x256xf32>
    %13 = arith.addf %7, %12 : vector<32x256xf32>
    %14 = vector.extract_strided_slice %2 {offsets = [0, 2], sizes = [32, 1], strides = [1, 1]} : vector<32x4xf32> to vector<32x1xf32>
    %15 = vector.extract_strided_slice %1 {offsets = [2, 0], sizes = [1, 256], strides = [1, 1]} : vector<4x256xf32> to vector<1x256xf32>
    %16 = vector.broadcast %14 : vector<32x1xf32> to vector<32x256xf32>
    %17 = vector.broadcast %15 : vector<1x256xf32> to vector<32x256xf32>
    %18 = arith.mulf %16, %17 : vector<32x256xf32>
    %19 = arith.addf %13, %18 : vector<32x256xf32>
    %20 = vector.extract_strided_slice %2 {offsets = [0, 3], sizes = [32, 1], strides = [1, 1]} : vector<32x4xf32> to vector<32x1xf32>
    %21 = vector.extract_strided_slice %1 {offsets = [3, 0], sizes = [1, 256], strides = [1, 1]} : vector<4x256xf32> to vector<1x256xf32>
    %22 = vector.broadcast %20 : vector<32x1xf32> to vector<32x256xf32>
    %23 = vector.broadcast %21 : vector<1x256xf32> to vector<32x256xf32>
    %24 = arith.mulf %22, %23 : vector<32x256xf32>
    %25 = arith.addf %19, %24 : vector<32x256xf32>
    %c0_4 = arith.constant 0 : index
    %c0_5 = arith.constant 0 : index
    %26 = vector.load %arg4[%c0_4, %c0_5] : memref<32x1xf32, #tpu.memory_space<vmem>>, vector<32x1xf32>
    %27 = vector.broadcast %26 : vector<32x1xf32> to vector<32x256xf32>
    %28 = arith.addf %25, %27 : vector<32x256xf32>
    %cst = arith.constant 0.000000e+00 : f32
    %29 = vector.broadcast %cst : f32 to vector<32x256xf32>
    %30 = arith.maximumf %28, %29 : vector<32x256xf32>
    %c0_6 = arith.constant 0 : index
    %c0_7 = arith.constant 0 : index
    %c0_8 = arith.constant 0 : index
    %31 = vector.load %arg11[%c0_6, %c0_7, %c0_8] : memref<1x32x256xf32, #tpu.memory_space<vmem>>, vector<1x32x256xf32>
    %32 = vector.shape_cast %31 : vector<1x32x256xf32> to vector<32x256xf32>
    %33 = vector.shape_cast %30 : vector<32x256xf32> to vector<1x32x256xf32>
    tpu.vector_store %arg11[%c0_6, %c0_7, %c0_8], %33 {strides = array<i32>} : memref<1x32x256xf32, #tpu.memory_space<vmem>>, vector<1x32x256xf32>,
    %cst_9 = arith.constant dense<0.000000e+00> : vector<32xf32>
    %34 = vector.multi_reduction <add>, %30, %cst_9 [1] : vector<32x256xf32> to vector<32xf32>
    %35 = vector.shape_cast %34 : vector<32xf32> to vector<32x1xf32>
    %c0_i32 = arith.constant 0 : i32
    %36 = arith.cmpi eq, %arg1, %c0_i32 : i32
    %37 = arith.extui %36 : i1 to i32
    %c0_i32_10 = arith.constant 0 : i32
    %38 = arith.cmpi ne, %37, %c0_i32_10 : i32
    scf.if %38 {
      %cst_17 = arith.constant 0.000000e+00 : f32
      %45 = vector.broadcast %cst_17 : f32 to vector<32x1xf32>
      %c0_18 = arith.constant 0 : index
      %c0_19 = arith.constant 0 : index
      %46 = vector.load %arg13[%c0_18, %c0_19] : memref<32x1xf32, #tpu.memory_space<vmem>>, vector<32x1xf32>
      tpu.vector_store %arg13[%c0_18, %c0_19], %45 {strides = array<i32>} : memref<32x1xf32, #tpu.memory_space<vmem>>, vector<32x1xf32>,
    } else {
    }
    %c0_11 = arith.constant 0 : index
    %c0_12 = arith.constant 0 : index
    %39 = vector.load %arg13[%c0_11, %c0_12] : memref<32x1xf32, #tpu.memory_space<vmem>>, vector<32x1xf32>
    %40 = arith.addf %39, %35 : vector<32x1xf32>
    %c0_13 = arith.constant 0 : index
    %c0_14 = arith.constant 0 : index
    %41 = vector.load %arg13[%c0_13, %c0_14] : memref<32x1xf32, #tpu.memory_space<vmem>>, vector<32x1xf32>
    tpu.vector_store %arg13[%c0_13, %c0_14], %40 {strides = array<i32>} : memref<32x1xf32, #tpu.memory_space<vmem>>, vector<32x1xf32>,
    %c0_i32_15 = arith.constant 0 : i32
    %42 = arith.cmpi eq, %arg1, %c0_i32_15 : i32
    %43 = arith.extui %42 : i1 to i32
    %c0_i32_16 = arith.constant 0 : i32
    %44 = arith.cmpi ne, %43, %c0_i32_16 : i32
    scf.if %44 {
      %c0_17 = arith.constant 0 : index
      %c0_18 = arith.constant 0 : index
      %45 = vector.load %arg13[%c0_17, %c0_18] : memref<32x1xf32, #tpu.memory_space<vmem>>, vector<32x1xf32>
      %cst_19 = arith.constant 3.906250e-03 : f32
      %46 = vector.broadcast %cst_19 : f32 to vector<32x1xf32>
      %47 = arith.mulf %45, %46 : vector<32x1xf32>
      %48 = tpu.iota {dimensions = array<i32: 0>} : vector<32x32xi32>
      %49 = tpu.iota {dimensions = array<i32: 1>} : vector<32x32xi32>
      %50 = arith.cmpi eq, %48, %49 : vector<32x32xi32>
      %51 = arith.extui %50 : vector<32x32xi1> to vector<32x32xi32>
      %52 = arith.sitofp %51 : vector<32x32xi32> to vector<32x32xf32>
      %53 = vector.broadcast %47 : vector<32x1xf32> to vector<32x32xf32>
      %54 = arith.mulf %53, %52 : vector<32x32xf32>
      %cst_20 = arith.constant dense<0.000000e+00> : vector<32xf32>
      %55 = vector.multi_reduction <add>, %54, %cst_20 [0] : vector<32x32xf32> to vector<32xf32>
      %56 = vector.shape_cast %55 : vector<32xf32> to vector<1x32xf32>
      %c0_21 = arith.constant 0 : index
      %c0_22 = arith.constant 0 : index
      %57 = vector.load %arg5[%c0_21, %c0_22] : memref<1x32xf32, #tpu.memory_space<vmem>>, vector<1x32xf32>
      %58 = arith.mulf %56, %57 : vector<1x32xf32>
      %c0_23 = arith.constant 0 : index
      %c0_24 = arith.constant 0 : index
      %59 = vector.load %arg6[%c0_23, %c0_24] : memref<1x32xf32, #tpu.memory_space<vmem>>, vector<1x32xf32>
      %60 = arith.addf %58, %59 : vector<1x32xf32>
      %cst_25 = arith.constant 0.000000e+00 : f32
      %61 = vector.broadcast %cst_25 : f32 to vector<1x32xf32>
      %62 = arith.maximumf %60, %61 : vector<1x32xf32>
      %c0_26 = arith.constant 0 : index
      %c0_27 = arith.constant 0 : index
      %63 = vector.load %arg7[%c0_26, %c0_27] : memref<32x512xf32, #tpu.memory_space<vmem>>, vector<32x512xf32>
      %cst_28 = arith.constant dense<0.000000e+00> : vector<1x512xf32>
      %64 = tpu.matmul %62, %63, %cst_28 {dimension_numbers = #tpu.dot_dimension_numbers<[1], [0], [0], [1], [0, 0, 1, 1], [], []>} : vector<1x32xf32>, vector<32x512xf32>, vector<1x512xf32> -> vector<1x512xf32>
      %c0_29 = arith.constant 0 : index
      %c0_30 = arith.constant 0 : index
      %65 = vector.load %arg8[%c0_29, %c0_30] : memref<1x512xf32, #tpu.memory_space<vmem>>, vector<1x512xf32>
      %66 = arith.mulf %64, %65 : vector<1x512xf32>
      %c0_31 = arith.constant 0 : index
      %c0_32 = arith.constant 0 : index
      %67 = vector.load %arg9[%c0_31, %c0_32] : memref<1x512xf32, #tpu.memory_space<vmem>>, vector<1x512xf32>
      %68 = arith.addf %66, %67 : vector<1x512xf32>
      %c0_33 = arith.constant 0 : index
      %c0_34 = arith.constant 0 : index
      %69 = vector.load %arg10[%c0_33, %c0_34] : memref<512x128xf32, #tpu.memory_space<vmem>>, vector<512x128xf32>
      %cst_35 = arith.constant dense<0.000000e+00> : vector<1x128xf32>
      %70 = tpu.matmul %68, %69, %cst_35 {dimension_numbers = #tpu.dot_dimension_numbers<[1], [0], [0], [1], [0, 0, 1, 1], [], []>} : vector<1x512xf32>, vector<512x128xf32>, vector<1x128xf32> -> vector<1x128xf32>
      %c0_36 = arith.constant 0 : index
      %c0_37 = arith.constant 0 : index
      %c0_38 = arith.constant 0 : index
      %71 = vector.load %arg12[%c0_36, %c0_37, %c0_38] : memref<1x1x128xf32, #tpu.memory_space<vmem>>, vector<1x1x128xf32>
      %72 = vector.shape_cast %71 : vector<1x1x128xf32> to vector<1x128xf32>
      %73 = vector.shape_cast %70 : vector<1x128xf32> to vector<1x1x128xf32>
      tpu.vector_store %arg12[%c0_36, %c0_37, %c0_38], %73 {strides = array<i32>} : memref<1x1x128xf32, #tpu.memory_space<vmem>>, vector<1x1x128xf32>,
    } else {
    }
    return
  }
  func.func @transform_0(%arg0: i32, %arg1: i32) -> (i32, i32, i32) {
    %c0_i32 = arith.constant 0 : i32
    %c0_i32_0 = arith.constant 0 : i32
    return %arg0, %c0_i32, %arg1 : i32, i32, i32
  }
  func.func @transform_1(%arg0: i32, %arg1: i32) -> (i32, i32) {
    %c0_i32 = arith.constant 0 : i32
    %c0_i32_0 = arith.constant 0 : i32
    %c0_i32_1 = arith.constant 0 : i32
    return %c0_i32, %c0_i32_0 : i32, i32
  }
  func.func @transform_2(%arg0: i32, %arg1: i32) -> (i32, i32) {
    %c0_i32 = arith.constant 0 : i32
    %c0_i32_0 = arith.constant 0 : i32
    %c0_i32_1 = arith.constant 0 : i32
    return %c0_i32, %c0_i32_0 : i32, i32
  }
  func.func @transform_3(%arg0: i32, %arg1: i32) -> (i32, i32) {
    %c0_i32 = arith.constant 0 : i32
    %c0_i32_0 = arith.constant 0 : i32
    %c0_i32_1 = arith.constant 0 : i32
    return %c0_i32, %c0_i32_0 : i32, i32
  }
  func.func @transform_4(%arg0: i32, %arg1: i32) -> (i32, i32) {
    %c0_i32 = arith.constant 0 : i32
    %c0_i32_0 = arith.constant 0 : i32
    %c0_i32_1 = arith.constant 0 : i32
    return %c0_i32, %c0_i32_0 : i32, i32
  }
  func.func @transform_5(%arg0: i32, %arg1: i32) -> (i32, i32) {
    %c0_i32 = arith.constant 0 : i32
    %c0_i32_0 = arith.constant 0 : i32
    %c0_i32_1 = arith.constant 0 : i32
    return %c0_i32, %c0_i32_0 : i32, i32
  }
  func.func @transform_6(%arg0: i32, %arg1: i32) -> (i32, i32) {
    %c0_i32 = arith.constant 0 : i32
    %c0_i32_0 = arith.constant 0 : i32
    %c0_i32_1 = arith.constant 0 : i32
    return %c0_i32, %c0_i32_0 : i32, i32
  }
  func.func @transform_7(%arg0: i32, %arg1: i32) -> (i32, i32) {
    %c0_i32 = arith.constant 0 : i32
    %c0_i32_0 = arith.constant 0 : i32
    %c0_i32_1 = arith.constant 0 : i32
    return %c0_i32, %c0_i32_0 : i32, i32
  }
  func.func @transform_8(%arg0: i32, %arg1: i32) -> (i32, i32) {
    %c0_i32 = arith.constant 0 : i32
    %c0_i32_0 = arith.constant 0 : i32
    %c0_i32_1 = arith.constant 0 : i32
    return %c0_i32, %c0_i32_0 : i32, i32
  }
  func.func @transform_9(%arg0: i32, %arg1: i32) -> (i32, i32, i32) {
    %c0_i32 = arith.constant 0 : i32
    %c0_i32_0 = arith.constant 0 : i32
    return %arg0, %c0_i32, %arg1 : i32, i32, i32
  }
  func.func @transform_10(%arg0: i32, %arg1: i32) -> (i32, i32, i32) {
    %c0_i32 = arith.constant 0 : i32
    %c0_i32_0 = arith.constant 0 : i32
    %c0_i32_1 = arith.constant 0 : i32
    return %arg0, %c0_i32, %c0_i32_0 : i32, i32, i32
  }
}

</mosaic_0001>

<bundles_post_ra>
// kernel: tpu_custom_call.1
= control target key start
LH: loop header
LB: loop body
LE: loop exit
PB: predicated region body
PF: predicated region fallthrough
CT: control target
= control target key end

     0   :  { %s1847_s0 = inlined_call_operand.vmem [shape: f32[2,4,256], index: 0, kind: input, shape index: {}]   ;;  %s1848_s1 = inlined_call_operand.vmem [shape: f32[32,4], index: 1, kind: input, shape index: {}]   ;;  %s1849_s2 = inlined_call_operand.vmem [shape: f32[32,1], index: 2, kind: input, shape index: {}]   ;;  %s1850_s3 = inlined_call_operand.vmem [shape: f32[1,32], index: 3, kind: input, shape index: {}]   ;;  %s1851_s4 = inlined_call_operand.vmem [shape: f32[1,32], index: 4, kind: input, shape index: {}]   ;;  %s1852_s5 = inlined_call_operand.hbm [shape: f32[32,512], index: 5, kind: input, shape index: {}]   ;;  %s1853_s6 = inlined_call_operand.vmem [shape: f32[1,512], index: 6, kind: input, shape index: {}]   ;;  %s1854_s7 = inlined_call_operand.vmem [shape: f32[1,512], index: 7, kind: input, shape index: {}]   ;;  %s1855_s8 = inlined_call_operand.hbm [shape: f32[512,128], index: 8, kind: input, shape index: {}]   ;;  %s1856_s9 = inlined_call_operand.hbm [shape: f32[2,32,256], index: 9, kind: output, shape index: {0}]   ;;  %s1857_s10 = inlined_call_operand.hbm [shape: f32[2,1,128], index: 10, kind: output, shape index: {1}]  }
   0x1   :  { %1860 = sst [smem:[#allocation18_spill]] %s1847_s0 }
   0x2   :  { %1861 = sst [smem:[#allocation19_spill]] %s1852_s5 }
   0x3   :  { %16 = vsyncpa [#allocation4], 0 }
   0x4   :  { %17 = vsyncpa [#allocation7], 0 }
   0x5   :  { %18 = vsyncpa [#allocation5], 0 }
   0x6   :  { %20 = vsyncpa [#allocation5 + $0x1], 0 }
   0x7   :  { %21 = vsyncpa [#allocation10], 0 }
   0x8   :  { %23 = vsyncpa [#allocation10 + $0x1], 0  ;;  %s1559_s13 = smov 0   ;;  %s1561_s14 = smov 0  }
   0x9   :  { %s1563_s15 = smov 0   ;;  %s1565_s16 = smov 0  }
   0xa   :  { %s1567_s17 = smov 0   ;;  %s1569_s18 = smov 0  }
   0xb LB: > { %1862 = sst [smem:[#allocation15_spill]] %s1485_s17  ;;  %s1178_s19 = sadd.s32 4294967295, %s1489_s18   ;;  %s1489_s18 = sphi %s1569_s18, %s29_s18   ;;  %s1485_s17 = sphi %s1567_s17, %s1873_s17   ;;  %s1481_s16 = sphi %s1565_s16, %s1872_s16   ;;  %s1477_s15 = sphi %s1563_s15, %s1876_s15   ;;  %s1473_s14 = sphi %s1561_s14, %s1875_s14   ;;  %s1469_s13 = sphi %s1559_s13, %s1874_s13  }
   0xc   : > { %s1179_s20 = sadd.s32 4294967294, %s1489_s18   ;;  %s41_s21 = sadd.s32 1, %s1485_s17 }
   0xd   : > { %s246_s22 = sadd.s32 1, %s1477_s15  ;;  %p43_p0 = scmp.ge.s32.totalorder %s41_s21, 2 }
   0xe   : > { %p256_p1 = scmp.ne.s32.totalorder %s1477_s15, %s1473_s14  ;;  %p257_p2 = scmp.eq.s32.totalorder %s1178_s19, 1 }
   0xf   : > { %p262_p3 = scmp.ne.s32.totalorder %s1473_s14, %s1469_s13  ;;  %s1878_s21 = smov (%p43_p0, %s41_s21), 0 }
  0x10   : > { %1863 = sst [smem:[#allocation16_spill]] %s1878_s21  ;;  %p1599_p4 = por %p257_p2, %p256_p1 }
  0x11   : > { %p263_p5 = scmp.eq.s32.totalorder %s1179_s20, 1  ;;  %s241_s24 = ssub.s32 %s1485_s17, %s1878_s21 }
  0x12   : > { %p1180_p6 = scmp.ge.s32.totalorder %s1489_s18, 1  ;;  %p244_p7 = scmp.eq.s32.totalorder %s241_s24, 0 }
  0x13   : > { %p1606_p8 = por %p263_p5, %p262_p3  ;;  %p296_p9 = scmp.lt.s32.totalorder %s1489_s18, 3 }
  0x14   : > { %s1612_s26 = scalar_select %p244_p7, %s1477_s15, %s246_s22  }
  0x15   : > { %p1614_p10 = pnand %p1180_p6, %p296_p9  ;;  %p1618_p11 = scmp.eq.s32.totalorder %s1178_s19, 0 }
  0x16   : > { %1866 = sst [smem:[#allocation17_spill]] %s1612_s26  ;;  %s1491_s12 = smov [#allocation3]  }
  0x17   : > { %s1869_s5 = sld [smem:[#allocation19_spill]]  ;;  %p1217_p12 = pneg %p1614_p10 }
  0x18   : > { %s321_s20 = sshll.u32 %s1491_s12, 4  ;;  %s339_s19 = sshll.u32 %s1855_s8, 4  ;;  %s322_s20 = int_to_ptr.vmem [resolvable:$true] %s321_s20  ;;  %s340_s19 = int_to_ptr.hbm [resolvable:$true] %s339_s19 }
  0x19   : > { %p1218_p13 = pnand %p1618_p11, %p1217_p12  ;;  %s1492_s21 = smov 512  }
  0x1a   : > { %s1493_s17 = smov 32   ;;  %s1494_s26 = smov [#allocation6]  }
  0x1b   : > { %s341_s29 = sshll.u32 %s1494_s26, 4  ;;  %s1495_s30 = smov 128   ;;  %s342_s29 = int_to_ptr.vmem [resolvable:$true] %s341_s29 }
  0x1c   : > { %370 = sbr.rel (%p1614_p10) target bundleno = 762 (0x2fa), region = 56 }
  0x1d   : > { %s319_s11 = sshll.u32 %s1869_s5, 4  ;;  %s1496_s5 = smov 8   ;;  %s320_s11 = int_to_ptr.hbm [resolvable:$true] %s319_s11 }
  0x1e   : > { %1220 = dma.hbm_to_vmem [thread:$0]  (!%p1218_p13), %s320_s11, 2048, %s322_s20, [#allocation4], %s1492_s21, %s1492_s21, %s1493_s17  }
  0x1f   : > { %1223 = dma.hbm_to_vmem [thread:$0]  (!%p1218_p13), %s340_s19, 8192, %s342_s29, [#allocation7], %s1495_s30, %s1495_s30, %s1496_s5  }
  0x21   : > { %1452 = dma.done.wait (%p1618_p11), [#allocation4], 2048  }
  0x22   : > { %1454 = vsyncadd (%p1618_p11), [#allocation4], 4294965248 }
  0x23   : > { %1456 = dma.done.wait (%p1618_p11), [#allocation7], 8192  }
  0x24   : > { %1458 = vsyncadd (%p1618_p11), [#allocation7], 4294959104  ;;  %v1497_v0 = vmov 2   ;;  %v1498_v1 = vmov 1   ;;  %v1499_v2 = vmov 0   ;;  %v434_v3 = vld [vmem:[%s1848_s1] sm:$0xff] }
  0x25   : > { %1300 = vset.pattern.permute.xlu0 %v1497_v0  ;;  %1297 = vset.pattern.permute.xlu1 %v1498_v1  ;;  %v436_v4 = vld [vmem:[%s1848_s1 + $0x10] sm:$0xff]  ;;  %v435_v5 = vld [vmem:[%s1848_s1 + $0x8] sm:$0xff]  ;;  %v1500_v6 = vmov 3   ;;  %v437_v7 = vld [vmem:[%s1848_s1 + $0x18] sm:$0xff]  ;;  %p423_p0 = scmp.lt.s32.totalorder %s1481_s16, 1  ;;  %s1870_s0 = sld [smem:[#allocation18_spill]] }
  0x26   : > { %1298 = vset.pattern.permute.xlu2 %v1499_v2  ;;  %512 = vperm.xlu0 %1300, %v434_v3   ;;  %v587_v8 = vld [vmem:[%s1849_s2] sm:$0xff]  ;;  %v588_v9 = vld [vmem:[%s1849_s2 + $0x8] sm:$0xff]  ;;  %v589_v10 = vld [vmem:[%s1849_s2 + $0x10] sm:$0xff]  ;;  %s1702_s12 = sand.u32 1, %s1473_s14   ;;  %vm651_vm0 = vcmask 7168   ;;  %vm723_vm4 = vcmask 261120  }
  0x27   : > { %474 = vperm.xlu1 %1297, %v434_v3   ;;  %450 = vperm.xlu2 %1298, %v436_v4   ;;  %v590_v11 = vld [vmem:[%s1849_s2 + $0x18] sm:$0xff]  ;;  %s424_s21 = scalar_select %p423_p0, %s1481_s16, 1 }
  0x28   : > { %s1187_s20 = sshll.u32 %s1702_s12, 6  ;;  %s1204_s28 = sshll.u32 %s1481_s16, 6 }
  0x29   : > { %s1203_s26 = sshll.u32 %s424_s21, 3  ;;  %s1715_s22 = scalar_lea.vmem [#allocation8], %s1187_s20 }
  0x2a   : > { %s1033_s27 = sshll.u32 %s1715_s22, 4  ;;  %s1032_s24 = scalar_lea.hbm %s1856_s9, %s1204_s28  ;;  %s1034_s27 = int_to_ptr.vmem [resolvable:$true] %s1033_s27 }
  0x2b   : > { %s430_s11 = scalar_lea.vmem %s1870_s0, %s1203_s26  ;;  %s1035_s19 = sshll.u32 %s1032_s24, 4  ;;  %s1036_s19 = int_to_ptr.hbm [resolvable:$true] %s1035_s19 }
  0x2c   : > { %v433_v19 = vld [vmem:[%s430_s11] sm:$0xff]  ;;  %s1015_s29 = scalar_lea.sflag [#allocation5], %s1702_s12  ;;  %s1385_s30 = sshra.s32 %s1036_s19, 4  ;;  %s1386_s30 = int_to_ptr.hbm [resolvable:$true] %s1385_s30 }
  0x2d   : > { %v459_v20 = vperm.slane %v433_v19, 0  ;;  %v460_v21 = vperm.slane %v433_v19, 4  ;;  %v489_v22 = vperm.slane %v433_v19, 1  ;;  %v490_v23 = vperm.slane %v433_v19, 5  ;;  %s1387_s5 = scalar_lea.hbm %s1386_s30, 64  ;;  %p1392_p5 = scmp.lt.s32.totalorder %s1386_s30, %s1856_s9 }
  0x2e   : > { %1305 = vset.pattern.permute.xlu0 %v1500_v6  ;;  %v527_v31 = vperm.slane %v433_v19, 2  ;;  %v528_v32 = vperm.slane %v433_v19, 6  ;;  %v565_v33 = vperm.slane %v433_v19, 3  ;;  %v566_v34 = vperm.slane %v433_v19, 7  ;;  %p1388_p1 = scmp.ne.s32.totalorder %s1386_s30, %s1387_s5 }
  0x2f   : > { %478 = vperm.xlu1 %1297, %v435_v5   ;;  %550 = vperm.xlu0 %1305, %v434_v3   ;;  %v1677_v26 = vperm.slane %v459_v20, 0  ;;  %v1679_v27 = vperm.slane %v460_v21, 0  ;;  %v1681_v28 = vperm.slane %v489_v22, 1  ;;  %v1683_v29 = vperm.slane %v490_v23, 1 }
  0x30   : > { %1299 = vset.pattern.permute.xlu2 %v1498_v1  ;;  %v1689_v39 = vperm.slane %v527_v31, 2  ;;  %v1691_v40 = vperm.slane %v528_v32, 2  ;;  %v1693_v41 = vperm.slane %v565_v33, 3  ;;  %v1695_v42 = vperm.slane %v566_v34, 3  ;;  %p1389_p2 = pnand %p1388_p1, %p1599_p4 }
  0x31   : > { %482 = vperm.xlu2 %1299, %v436_v4  }
  0x32   : > { %p1390_p3 = pneg %p1389_p2 }
  0x37   : > { %1301 = vset.pattern.permute.xlu1 %v1497_v0  ;;  %1306 = vset.pattern.permute.xlu0 %v1499_v2 }
  0x38   : > { %516 = vperm.xlu1 %1301, %v435_v5   ;;  %440 = vperm.xlu0 %1306, %v434_v3  }
  0x39   : > { %1302 = vset.pattern.permute.xlu2 %v1499_v2 }
  0x3a   : > { %455 = vperm.xlu2 %1302, %v437_v7  }
  0x40   : > { %1303 = vset.pattern.permute.xlu1 %v1498_v1  ;;  %445 = vperm.xlu0 %1306, %v435_v5  }
  0x41   : > { %486 = vperm.xlu1 %1303, %v437_v7  }
  0x42   : > { %1304 = vset.pattern.permute.xlu2 %v1497_v0  ;;  %v1501_v0 = vmov 0.0  }
  0x43   : > { %520 = vperm.xlu2 %1304, %v436_v4   ;;  %652 = vst.msk [vmem:[#allocation2] sm:$0xff] %vm651_vm0, %v1501_v0 }
  0x44   : > { %653 = vst.msk [vmem:[#allocation2 + $0x8] sm:$0xff] %vm651_vm0, %v1501_v0 }
  0x45   : > { %654 = vst.msk [vmem:[#allocation2 + $0x10] sm:$0xff] %vm651_vm0, %v1501_v0 }
  0x46   : > { %655 = vst.msk [vmem:[#allocation2 + $0x18] sm:$0xff] %vm651_vm0, %v1501_v0 }
  0x48   : > { %593 = vperm.xlu0 %1306, %v587_v8  }
  0x49   : > { %1307 = vset.pattern.permute.xlu1 %v1500_v6 }
  0x4a   : > { %554 = vperm.xlu1 %1307, %v435_v5  }
  0x4b   : > { %524 = vperm.xlu2 %1304, %v437_v7  }
  0x52   : > { %558 = vperm.xlu1 %1307, %v436_v4  }
  0x53   : > { %1308 = vset.pattern.permute.xlu2 %v1500_v6 }
  0x54   : > { %562 = vperm.xlu2 %1308, %v437_v7  }
  0x5a   : > { %1309 = vset.pattern.permute.xlu1 %v1499_v2 }
  0x5b   : > { %598 = vperm.xlu1 %1309, %v588_v9  }
  0x5c   : > { %1310 = vset.pattern.permute.xlu2 %v1499_v2 }
  0x5d   : > { %603 = vperm.xlu2 %1310, %v589_v10  }
  0x63   : > { %608 = vperm.xlu1 %1309, %v590_v11  }
  0x81   : > { %v451_v12 = vpop.permute.xlu2 %450 }
  0x82   : > { %v469_v60 = vmul.f32 %v1677_v26, %v451_v12  ;;  %v470_v61 = vmul.f32 %v1679_v27, %v451_v12 }
  0x8b   : > { %v483_v13 = vpop.permute.xlu2 %482 }
  0x8c   : > { %v499_v62 = vmul.f32 %v1681_v28, %v483_v13  ;;  %v500_v63 = vmul.f32 %v1683_v29, %v483_v13 }
  0x8e   : > { %v507_v5 = vadd.f32 %v499_v62, %v469_v60  ;;  %v508_v6 = vadd.f32 %v500_v63, %v470_v61  ;;  %v656_v62 = vld [vmem:[#allocation2] sm:$0xff] }
  0x94   : > { %v1673_v17 = vpop.permute.xlu2 %455 }
  0x98   : > { %v513_v15 = vpop.permute.xlu0 %512 }
  0x99   : > { %v475_v14 = vpop.permute.xlu1 %474  ;;  %v533_v47 = vmul.f32 %v1689_v39, %v513_v15  ;;  %v534_v48 = vmul.f32 %v1691_v40, %v513_v15 }
  0x9a   : > { %v495_v37 = vmul.f32 %v1681_v28, %v475_v14  ;;  %v496_v38 = vmul.f32 %v1683_v29, %v475_v14 }
  0x9d   : > { %v521_v30 = vpop.permute.xlu2 %520 }
  0x9e   : > { %v537_v7 = vmul.f32 %v1689_v39, %v521_v30  ;;  %v538_v8 = vmul.f32 %v1691_v40, %v521_v30 }
  0xa0   : > { %v545_v14 = vadd.f32 %v537_v7, %v507_v5  ;;  %v546_v15 = vadd.f32 %v538_v8, %v508_v6  ;;  %v657_v7 = vld [vmem:[#allocation2 + $0x8] sm:$0xff] }
  0xa1   : > { %v1668_v16 = vpop.permute.xlu1 %478  ;;  %v551_v18 = vpop.permute.xlu0 %550 }
  0xa2   : > { %v571_v50 = vmul.f32 %v1693_v41, %v551_v18  ;;  %v572_v51 = vmul.f32 %v1695_v42, %v551_v18  ;;  %v497_v11 = vmul.f32 %v1681_v28, %v1668_v16  ;;  %v498_v12 = vmul.f32 %v1683_v29, %v1668_v16 }
  0xa5   : > { %v525_v49 = vpop.permute.xlu2 %524 }
  0xaa   : > { %v1675_v24 = vpop.permute.xlu1 %516  ;;  %v441_v25 = vpop.permute.xlu0 %440 }
  0xab   : > { %v465_v35 = vmul.f32 %v1677_v26, %v441_v25  ;;  %v466_v36 = vmul.f32 %v1679_v27, %v441_v25  ;;  %v535_v23 = vmul.f32 %v1689_v39, %v1675_v24  ;;  %v536_v25 = vmul.f32 %v1691_v40, %v1675_v24 }
  0xac   : > { %v472_v24 = vmul.f32 %v1679_v27, %v1673_v17 }
  0xad   : > { %v503_v43 = vadd.f32 %v495_v37, %v465_v35  ;;  %v504_v44 = vadd.f32 %v496_v38, %v466_v36  ;;  %v471_v37 = vmul.f32 %v1677_v26, %v1673_v17 }
  0xae   : > { %v563_v1 = vpop.permute.xlu2 %562 }
  0xaf   : > { %v541_v52 = vadd.f32 %v533_v47, %v503_v43  ;;  %v542_v53 = vadd.f32 %v534_v48, %v504_v44 }
  0xb1   : > { %v579_v54 = vadd.f32 %v571_v50, %v541_v52  ;;  %v580_v55 = vadd.f32 %v572_v51, %v542_v53 }
  0xb2   : > { %v446_v45 = vpop.permute.xlu0 %445 }
  0xb3   : > { %v487_v46 = vpop.permute.xlu1 %486  ;;  %v467_v9 = vmul.f32 %v1677_v26, %v446_v45  ;;  %v468_v10 = vmul.f32 %v1679_v27, %v446_v45  ;;  %v577_v27 = vmul.f32 %v1693_v41, %v563_v1 }
  0xb4   : > { %v501_v16 = vmul.f32 %v1681_v28, %v487_v46  ;;  %v502_v32 = vmul.f32 %v1683_v29, %v487_v46  ;;  %v539_v28 = vmul.f32 %v1689_v39, %v525_v49  ;;  %v540_v29 = vmul.f32 %v1691_v40, %v525_v49 }
  0xb5   : > { %v505_v20 = vadd.f32 %v497_v11, %v467_v9  ;;  %v506_v21 = vadd.f32 %v498_v12, %v468_v10  ;;  %v578_v39 = vmul.f32 %v1695_v42, %v563_v1  ;;  %v659_v12 = vld [vmem:[#allocation2 + $0x18] sm:$0xff] }
  0xb6   : > { %v509_v46 = vadd.f32 %v501_v16, %v471_v37  ;;  %v510_v47 = vadd.f32 %v502_v32, %v472_v24  ;;  %v756_v16 = vld [vmem:[#allocation3 + $0x70] sm:$0xff]  ;;  %v757_v32 = vld [vmem:[#allocation3 + $0x78] sm:$0xff]  ;;  %v746_v37 = vld [vmem:[#allocation3 + $0x20] sm:$0xff] }
  0xb7   : > { %v604_v22 = vpop.permute.xlu2 %603  ;;  %v543_v38 = vadd.f32 %v535_v23, %v505_v20  ;;  %v544_v43 = vadd.f32 %v536_v25, %v506_v21  ;;  %v680_v21 = vlaneseq  ;;  %813 = vmatpush.msra.mxu2 %v756_v16  ;;  %833 = vmatpush.msra.mxu3 %v757_v32  ;;  %v910_v16 = vld [vmem:[#allocation6 + $0x148] sm:$0xff] }
  0xb8   : > { %v547_v53 = vadd.f32 %v539_v28, %v509_v46  ;;  %v749_v28 = vld [vmem:[#allocation3 + $0x38] sm:$0xff]  ;;  %v926_v32 = vld [vmem:[#allocation6 + $0x1c8] sm:$0xff] }
  0xb9   : > { %v1757_v23 = vand.u32 127, %v680_v21  ;;  %v745_v46 = vld [vmem:[#allocation3 + $0x18] sm:$0xff] }
  0xba   : > { %v594_v56 = vpop.permute.xlu0 %593 }
  0xbb   : > { %v611_v57 = vadd.f32 %v594_v56, %v579_v54  ;;  %v612_v58 = vadd.f32 %v594_v56, %v580_v55  ;;  %v548_v54 = vadd.f32 %v540_v29, %v510_v47  ;;  %v585_v56 = vadd.f32 %v577_v27, %v547_v53  ;;  %v742_v29 = vld [vmem:[#allocation3] sm:$0xff]  ;;  %v884_v27 = vld [vmem:[#allocation6 + $0x78] sm:$0xff] }
  0xbc   : > { %v555_v59 = vpop.permute.xlu1 %554 }
  0xbd   : > { %v619_v2 = vmax.f32 %v611_v57, 0.0  ;;  %v620_v3 = vmax.f32 %v612_v58, 0.0  ;;  %v573_v33 = vmul.f32 %v1693_v41, %v555_v59  ;;  %v574_v34 = vmul.f32 %v1695_v42, %v555_v59 }
  0xbe   : > { %v586_v57 = vadd.f32 %v578_v39, %v548_v54  ;;  %v900_v39 = vld [vmem:[#allocation6 + $0xf8] sm:$0xff]  ;;  %v899_v54 = vld [vmem:[#allocation6 + $0xf0] sm:$0xff] }
  0xbf   : > { %627 = vst [vmem:[%s1715_s22] sm:$0xff] %v619_v2  ;;  %v635_v4 = vadd.f32 %v620_v3, %v619_v2  ;;  %v581_v48 = vadd.f32 %v573_v33, %v543_v38  ;;  %v582_v50 = vadd.f32 %v574_v34, %v544_v43  ;;  %v750_v33 = vld [vmem:[#allocation3 + $0x40] sm:$0xff]  ;;  %v751_v34 = vld [vmem:[#allocation3 + $0x48] sm:$0xff]  ;;  %v748_v43 = vld [vmem:[#allocation3 + $0x30] sm:$0xff] }
  0xc0   : > { %628 = vst [vmem:[%s1715_s22 + $0x8] sm:$0xff] %v620_v3  ;;  %v658_v3 = vld [vmem:[#allocation2 + $0x10] sm:$0xff]  ;;  %v747_v38 = vld [vmem:[#allocation3 + $0x28] sm:$0xff] }
  0xc1   : > { %636 = vadd.xlane.f32.xlu2 %v635_v4 }
  0xc4   : > { %v559_v13 = vpop.permute.xlu1 %558 }
  0xc5   : > { %v575_v18 = vmul.f32 %v1693_v41, %v559_v13  ;;  %v576_v19 = vmul.f32 %v1695_v42, %v559_v13 }
  0xc7   : > { %v583_v30 = vadd.f32 %v575_v18, %v545_v14  ;;  %v584_v31 = vadd.f32 %v576_v19, %v546_v15 }
  0xc9   : > { %v615_v35 = vadd.f32 %v604_v22, %v583_v30  ;;  %v616_v36 = vadd.f32 %v604_v22, %v584_v31  ;;  %v681_v22 = vshrl.u32 %v680_v21, 7  ;;  %v754_v30 = vld [vmem:[#allocation3 + $0x60] sm:$0xff]  ;;  %v755_v31 = vld [vmem:[#allocation3 + $0x68] sm:$0xff] }
  0xca   : > { %773 = vmatpush.msra.mxu0 %v754_v30  ;;  %793 = vmatpush.msra.mxu1 %v755_v31  ;;  %v893_v30 = vld [vmem:[#allocation6 + $0xc0] sm:$0xff] }
  0xcb   : > { %v623_v44 = vmax.f32 %v615_v35, 0.0  ;;  %v624_v45 = vmax.f32 %v616_v36, 0.0  ;;  %v682_v25 = vadd.s32 8, %v681_v22  ;;  %v752_v35 = vld [vmem:[#allocation3 + $0x50] sm:$0xff]  ;;  %v753_v36 = vld [vmem:[#allocation3 + $0x58] sm:$0xff]  ;;  %vm687_vm1 = vcmp.eq.s32.totalorder %v681_v22, %v1757_v23 }
  0xcc   : > { %v683_v24 = vadd.s32 16, %v681_v22  ;;  %774 = vmatpush.msra.mxu0 %v750_v33  ;;  %794 = vmatpush.msra.mxu1 %v751_v34  ;;  %v1190_v47 = vsel %vm687_vm1, 1.0, %v1501_v0  ;;  %v876_v33 = vld [vmem:[#allocation6 + $0x38] sm:$0xff] }
  0xcd   : > { %631 = vst [vmem:[%s1715_s22 + $0x20] sm:$0xff] %v623_v44  ;;  %v599_v51 = vpop.permute.xlu1 %598  ;;  %v641_v26 = vadd.f32 %v624_v45, %v623_v44  ;;  %vm688_vm2 = vcmp.eq.s32.totalorder %v682_v25, %v1757_v23  ;;  %814 = vmatpush.msra.mxu2 %v752_v35  ;;  %834 = vmatpush.msra.mxu3 %v753_v36  ;;  %v743_v44 = vld [vmem:[#allocation3 + $0x8] sm:$0xff]  ;;  %v877_v25 = vld [vmem:[#allocation6 + $0x40] sm:$0xff]  ;;  %v892_v34 = vld [vmem:[#allocation6 + $0xb8] sm:$0xff] }
  0xce   : > { %632 = vst [vmem:[%s1715_s22 + $0x28] sm:$0xff] %v624_v45  ;;  %v613_v52 = vadd.f32 %v599_v51, %v581_v48  ;;  %v614_v17 = vadd.f32 %v599_v51, %v582_v50  ;;  %775 = vmatpush.msra.mxu0 %v746_v37  ;;  %795 = vmatpush.msra.mxu1 %v747_v38  ;;  %v744_v45 = vld [vmem:[#allocation3 + $0x10] sm:$0xff]  ;;  %v1191_v50 = vsel %vm688_vm2, 1.0, %v1501_v0  ;;  %v684_v51 = vadd.s32 24, %v681_v22  ;;  %v909_v36 = vld [vmem:[#allocation6 + $0x140] sm:$0xff] }
  0xcf   : > { %642 = vadd.xlane.f32.xlu1 %v641_v26  ;;  %815 = vmatpush.msra.mxu2 %v748_v43  ;;  %vm689_vm3 = vcmp.eq.s32.totalorder %v683_v24, %v1757_v23  ;;  %v911_v22 = vld [vmem:[#allocation6 + $0x150] sm:$0xff]  ;;  %v925_v37 = vld [vmem:[#allocation6 + $0x1c0] sm:$0xff] }
  0xd0   : > { %v621_v40 = vmax.f32 %v613_v52, 0.0  ;;  %v622_v49 = vmax.f32 %v614_v17, 0.0  ;;  %835 = vmatpush.msra.mxu3 %v749_v28  ;;  %776 = vmatpush.msra.mxu0 %v742_v29  ;;  %vm690_vm5 = vcmp.eq.s32.totalorder %v684_v51, %v1757_v23  ;;  %v927_v23 = vld [vmem:[#allocation6 + $0x1d0] sm:$0xff]  ;;  %v908_v28 = vld [vmem:[#allocation6 + $0x138] sm:$0xff]  ;;  %v889_v51 = vld [vmem:[#allocation6 + $0xa0] sm:$0xff] }
  0xd1   : > { %796 = vmatpush.msra.mxu1 %v743_v44  ;;  %816 = vmatpush.msra.mxu2 %v744_v45  ;;  %v875_v24 = vld [vmem:[#allocation6 + $0x30] sm:$0xff]  ;;  %v924_v29 = vld [vmem:[#allocation6 + $0x1b8] sm:$0xff]  ;;  %v874_v44 = vld [vmem:[#allocation6 + $0x28] sm:$0xff] }
  0xd2   : > { %629 = vst [vmem:[%s1715_s22 + $0x10] sm:$0xff] %v621_v40  ;;  %v638_v55 = vadd.f32 %v622_v49, %v621_v40  ;;  %836 = vmatpush.msra.mxu3 %v745_v46  ;;  %v883_v40 = vld [vmem:[#allocation6 + $0x70] sm:$0xff]  ;;  %933 = vmatpush.msrb.mxu0 %v884_v27  ;;  %v890_v45 = vld [vmem:[#allocation6 + $0xa8] sm:$0xff]  ;;  %v888_v27 = vld [vmem:[#allocation6 + $0x98] sm:$0xff] }
  0xd3   : > { %630 = vst [vmem:[%s1715_s22 + $0x18] sm:$0xff] %v622_v49  ;;  %v1192_v49 = vsel %vm689_vm3, 1.0, %v1501_v0  ;;  %953 = vmatpush.msrb.mxu1 %v900_v39  ;;  %v891_v38 = vld [vmem:[#allocation6 + $0xb0] sm:$0xff] }
  0xd4   : > { %639 = vadd.xlane.f32.xlu0 %v638_v55  ;;  %934 = vmatpush.msrb.mxu0 %v883_v40  ;;  %v739_v40 = vld [vmem:[%s1851_s4] sm:$0x1] }
  0xd5   : > { %v609_v58 = vpop.permute.xlu1 %608  ;;  %954 = vmatpush.msrb.mxu1 %v899_v54 }
  0xd6   : > { %v617_v59 = vadd.f32 %v609_v58, %v585_v56  ;;  %v618_v60 = vadd.f32 %v609_v58, %v586_v57  ;;  %v882_v56 = vld [vmem:[#allocation6 + $0x68] sm:$0xff]  ;;  %v916_v58 = vld [vmem:[#allocation6 + $0x178] sm:$0xff] }
  0xd7   : > { %v898_v57 = vld [vmem:[#allocation6 + $0xe8] sm:$0xff]  ;;  %973 = vmatpush.msrb.mxu2 %v916_v58  ;;  %935 = vmatpush.msrb.mxu0 %v882_v56  ;;  %v887_v56 = vld [vmem:[#allocation6 + $0x90] sm:$0xff] }
  0xd8   : > { %v625_v61 = vmax.f32 %v617_v59, 0.0  ;;  %v626_v41 = vmax.f32 %v618_v60, 0.0  ;;  %v881_v59 = vld [vmem:[#allocation6 + $0x60] sm:$0xff]  ;;  %v932_v60 = vld [vmem:[#allocation6 + $0x1f8] sm:$0xff]  ;;  %955 = vmatpush.msrb.mxu1 %v898_v57  ;;  %v906_v57 = vld [vmem:[#allocation6 + $0x128] sm:$0xff] }
  0xd9   : > { %993 = vmatpush.msrb.mxu3 %v932_v60  ;;  %936 = vmatpush.msrb.mxu0 %v881_v59  ;;  %v922_v58 = vld [vmem:[#allocation6 + $0x1a8] sm:$0xff] }
  0xda   : > { %633 = vst [vmem:[%s1715_s22 + $0x30] sm:$0xff] %v625_v61  ;;  %v644_v42 = vadd.f32 %v626_v41, %v625_v61  ;;  %v870_v59 = vld [vmem:[#allocation6 + $0x8] sm:$0xff] }
  0xdb   : > { %634 = vst [vmem:[%s1715_s22 + $0x38] sm:$0xff] %v626_v41  ;;  %v886_v60 = vld [vmem:[#allocation6 + $0x88] sm:$0xff]  ;;  %s1391_s22 = scalar_lea.hbm %s1856_s9, 128 }
  0xdc   : > { %645 = vadd.xlane.f32.xlu2 %v644_v42  ;;  %v897_v42 = vld [vmem:[#allocation6 + $0xe0] sm:$0xff]  ;;  %p1393_p6 = scmp.lt.s32.totalorder %s1391_s22, %s1387_s5 }
  0xdd   : > { %956 = vmatpush.msrb.mxu1 %v897_v42  ;;  %v869_v42 = vld [vmem:[#allocation6] sm:$0xff] }
  0xde   : > { %p1394_p7 = por %p1393_p6, %p1392_p5 }
  0xe0   : > { %p1395_p9 = pnand %p1394_p7, %p1390_p3 }
 0x134   : > { %v637_v63 = vpop.xlane.xlu2 %636 }
 0x135   : > { %v660_v1 = vadd.f32 %v656_v62, %v637_v63  ;;  %v915_v62 = vld [vmem:[#allocation6 + $0x170] sm:$0xff] }
 0x136   : > { %v931_v63 = vld [vmem:[#allocation6 + $0x1f0] sm:$0xff]  ;;  %974 = vmatpush.msrb.mxu2 %v915_v62  ;;  %v885_v62 = vld [vmem:[#allocation6 + $0x80] sm:$0xff] }
 0x137   : > { %665 = vst.msk [vmem:[#allocation2] sm:$0xff] %vm651_vm0, %v660_v1  ;;  %994 = vmatpush.msrb.mxu3 %v931_v63  ;;  %v904_v63 = vld [vmem:[#allocation6 + $0x118] sm:$0xff] }
 0x13e   : > { %v672_v2 = vld [vmem:[#allocation2] sm:$0xff] }
 0x13f   : > { %v676_v4 = vmul.f32 0.00390625, %v672_v2  ;;  %v1193_v2 = vsel %vm690_vm5, 1.0, %v1501_v0 }
 0x141   : > { %701 = vperm.xlu2 %1310, %v676_v4   ;;  %v930_v4 = vld [vmem:[#allocation6 + $0x1e8] sm:$0xff] }
 0x142   : > { %v643_v5 = vpop.xlane.xlu1 %642  ;;  %995 = vmatpush.msrb.mxu3 %v930_v4  ;;  %v902_v4 = vld [vmem:[#allocation6 + $0x108] sm:$0xff] }
 0x143   : > { %v662_v6 = vadd.f32 %v658_v3, %v643_v5  ;;  %v914_v3 = vld [vmem:[#allocation6 + $0x168] sm:$0xff]  ;;  %v880_v5 = vld [vmem:[#allocation6 + $0x58] sm:$0xff] }
 0x144   : > { %975 = vmatpush.msrb.mxu2 %v914_v3  ;;  %937 = vmatpush.msrb.mxu0 %v880_v5  ;;  %v919_v3 = vld [vmem:[#allocation6 + $0x190] sm:$0xff]  ;;  %v918_v5 = vld [vmem:[#allocation6 + $0x188] sm:$0xff] }
 0x145   : > { %667 = vst.msk [vmem:[#allocation2 + $0x10] sm:$0xff] %vm651_vm0, %v662_v6  ;;  %v896_v6 = vld [vmem:[#allocation6 + $0xd8] sm:$0xff] }
 0x146   : > { %957 = vmatpush.msrb.mxu1 %v896_v6  ;;  %v901_v6 = vld [vmem:[#allocation6 + $0x100] sm:$0xff] }
 0x147   : > { %v640_v8 = vpop.xlane.xlu0 %639 }
 0x148   : > { %v661_v9 = vadd.f32 %v657_v7, %v640_v8  ;;  %v913_v8 = vld [vmem:[#allocation6 + $0x160] sm:$0xff] }
 0x149   : > { %976 = vmatpush.msrb.mxu2 %v913_v8  ;;  %v841_v8 = vld [vmem:[%s1853_s6] sm:$0xf] }
 0x14a   : > { %666 = vst.msk [vmem:[#allocation2 + $0x8] sm:$0xff] %vm651_vm0, %v661_v9  ;;  %v929_v9 = vld [vmem:[#allocation6 + $0x1e0] sm:$0xff] }
 0x14b   : > { %996 = vmatpush.msrb.mxu3 %v929_v9  ;;  %v855_v9 = vld [vmem:[%s1854_s7] sm:$0xf] }
 0x14c   : > { %v674_v10 = vld [vmem:[#allocation2 + $0x10] sm:$0xff] }
 0x14d   : > { %v678_v11 = vmul.f32 0.00390625, %v674_v10 }
 0x14f   : > { %711 = vperm.xlu1 %1309, %v678_v11   ;;  %v646_v13 = vpop.xlane.xlu2 %645 }
 0x150   : > { %v663_v14 = vadd.f32 %v659_v12, %v646_v13  ;;  %v879_v12 = vld [vmem:[#allocation6 + $0x50] sm:$0xff] }
 0x151   : > { %v673_v15 = vld [vmem:[#allocation2 + $0x8] sm:$0xff]  ;;  %v895_v13 = vld [vmem:[#allocation6 + $0xd0] sm:$0xff]  ;;  %938 = vmatpush.msrb.mxu0 %v879_v12  ;;  %v857_v12 = vperm.slane %v855_v9, 0 }
 0x152   : > { %668 = vst.msk [vmem:[#allocation2 + $0x18] sm:$0xff] %vm651_vm0, %v663_v14  ;;  %v677_v18 = vmul.f32 0.00390625, %v673_v15  ;;  %v912_v14 = vld [vmem:[#allocation6 + $0x158] sm:$0xff]  ;;  %958 = vmatpush.msrb.mxu1 %v895_v13  ;;  %v858_v13 = vperm.slane %v855_v9, 1 }
 0x153   : > { %v928_v15 = vld [vmem:[#allocation6 + $0x1d8] sm:$0xff]  ;;  %977 = vmatpush.msrb.mxu2 %v912_v14 }
 0x154   : > { %706 = vperm.xlu0 %1306, %v677_v18   ;;  %997 = vmatpush.msrb.mxu3 %v928_v15 }
 0x155   : > { %978 = vmatpush.msrb.mxu2 %v911_v22  ;;  %v846_v22 = vperm.slane %v841_v8, 3 }
 0x156   : > { %998 = vmatpush.msrb.mxu3 %v927_v23  ;;  %v859_v23 = vperm.slane %v855_v9, 2 }
 0x157   : > { %979 = vmatpush.msrb.mxu2 %v910_v16 }
 0x158   : > { %999 = vmatpush.msrb.mxu3 %v926_v32 }
 0x159   : > { %v675_v19 = vld [vmem:[#allocation2 + $0x18] sm:$0xff]  ;;  %980 = vmatpush.msrb.mxu2 %v909_v36 }
 0x15a   : > { %v679_v20 = vmul.f32 0.00390625, %v675_v19  ;;  %v878_v19 = vld [vmem:[#allocation6 + $0x48] sm:$0xff]  ;;  %1000 = vmatpush.msrb.mxu3 %v925_v37 }
 0x15b   : > { %939 = vmatpush.msrb.mxu0 %v878_v19  ;;  %981 = vmatpush.msrb.mxu2 %v908_v28 }
 0x15c   : > { %716 = vperm.xlu0 %1306, %v679_v20   ;;  %v894_v20 = vld [vmem:[#allocation6 + $0xc8] sm:$0xff]  ;;  %1001 = vmatpush.msrb.mxu3 %v924_v29 }
 0x15d   : > { %959 = vmatpush.msrb.mxu1 %v894_v20  ;;  %940 = vmatpush.msrb.mxu0 %v877_v25  ;;  %v860_v25 = vperm.slane %v855_v9, 3 }
 0x15f   : > { %960 = vmatpush.msrb.mxu1 %v893_v30  ;;  %941 = vmatpush.msrb.mxu0 %v876_v33 }
 0x161   : > { %961 = vmatpush.msrb.mxu1 %v892_v34  ;;  %942 = vmatpush.msrb.mxu0 %v875_v24 }
 0x163   : > { %962 = vmatpush.msrb.mxu1 %v891_v38  ;;  %943 = vmatpush.msrb.mxu0 %v874_v44 }
 0x165   : > { %963 = vmatpush.msrb.mxu1 %v890_v45 }
 0x167   : > { %964 = vmatpush.msrb.mxu1 %v889_v51 }
 0x169   : > { %965 = vmatpush.msrb.mxu1 %v888_v27 }
 0x16b   : > { %966 = vmatpush.msrb.mxu1 %v887_v56 }
 0x16d   : > { %967 = vmatpush.msrb.mxu1 %v886_v60 }
 0x16f   : > { %968 = vmatpush.msrb.mxu1 %v885_v62 }
 0x19b   : > { %v702_v48 = vpop.permute.xlu2 %701 }
 0x19c   : > { %v719_v52 = vmul.f32 %v1190_v47, %v702_v48  ;;  %v907_v47 = vld [vmem:[#allocation6 + $0x130] sm:$0xff] }
 0x19d   : > { %v923_v48 = vld [vmem:[#allocation6 + $0x1b0] sm:$0xff]  ;;  %982 = vmatpush.msrb.mxu2 %v907_v47 }
 0x19e   : > { %v724_v61 = vsel %vm723_vm4, %v719_v52, 0.0  ;;  %v737_v52 = vld [vmem:[%s1850_s3] sm:$0x1]  ;;  %1002 = vmatpush.msrb.mxu3 %v923_v48 }
 0x19f   : > { %983 = vmatpush.msrb.mxu2 %v906_v57 }
 0x1a0   : > { %1003 = vmatpush.msrb.mxu3 %v922_v58 }
 0x1c1   : > { %v712_v53 = vpop.permute.xlu1 %711 }
 0x1c2   : > { %v721_v41 = vmul.f32 %v1192_v49, %v712_v53 }
 0x1c4   : > { %v727_v10 = vsel %vm723_vm4, %v721_v41, 0.0  ;;  %v921_v41 = vld [vmem:[#allocation6 + $0x1a0] sm:$0xff] }
 0x1c5   : > { %1004 = vmatpush.msrb.mxu3 %v921_v41 }
 0x1c6   : > { %v707_v26 = vpop.permute.xlu0 %706 }
 0x1c7   : > { %v720_v17 = vmul.f32 %v1191_v50, %v707_v26  ;;  %v873_v50 = vld [vmem:[#allocation6 + $0x20] sm:$0xff] }
 0x1c8   : > { %944 = vmatpush.msrb.mxu0 %v873_v50 }
 0x1c9   : > { %v725_v55 = vsel %vm723_vm4, %v720_v17, 0.0  ;;  %v872_v17 = vld [vmem:[#allocation6 + $0x18] sm:$0xff] }
 0x1ca   : > { %v726_v1 = vadd.f32 %v725_v55, %v724_v61  ;;  %945 = vmatpush.msrb.mxu0 %v872_v17  ;;  %v871_v55 = vld [vmem:[#allocation6 + $0x10] sm:$0xff]  ;;  %v905_v61 = vld [vmem:[#allocation6 + $0x120] sm:$0xff] }
 0x1cb   : > { %984 = vmatpush.msrb.mxu2 %v905_v61 }
 0x1cc   : > { %v728_v0 = vadd.f32 %v727_v10, %v726_v1  ;;  %946 = vmatpush.msrb.mxu0 %v871_v55  ;;  %v920_v1 = vld [vmem:[#allocation6 + $0x198] sm:$0xff]  ;;  %v843_v10 = vperm.slane %v841_v8, 0 }
 0x1cd   : > { %985 = vmatpush.msrb.mxu2 %v904_v63  ;;  %1005 = vmatpush.msrb.mxu3 %v920_v1 }
 0x1ce   : > { %v717_v7 = vpop.permute.xlu0 %716  ;;  %947 = vmatpush.msrb.mxu0 %v870_v59 }
 0x1cf   : > { %v722_v11 = vmul.f32 %v1193_v2, %v717_v7  ;;  %v903_v2 = vld [vmem:[#allocation6 + $0x110] sm:$0xff]  ;;  %1006 = vmatpush.msrb.mxu3 %v919_v3  ;;  %v917_v7 = vld [vmem:[#allocation6 + $0x180] sm:$0xff] }
 0x1d0   : > { %948 = vmatpush.msrb.mxu0 %v869_v42  ;;  %986 = vmatpush.msrb.mxu2 %v903_v2 }
 0x1d1   : > { %v729_v18 = vsel %vm723_vm4, %v722_v11, 0.0  ;;  %1007 = vmatpush.msrb.mxu3 %v918_v5  ;;  %v844_v11 = vperm.slane %v841_v8, 1 }
 0x1d2   : > { %v730_v21 = vadd.f32 %v729_v18, %v728_v0  ;;  %987 = vmatpush.msrb.mxu2 %v902_v4 }
 0x1d3   : > { %1008 = vmatpush.msrb.mxu3 %v917_v7 }
 0x1d4   : > { %v731_v31 = vrot.slane %v730_v21, 4  ;;  %988 = vmatpush.msrb.mxu2 %v901_v6 }
 0x1d6   : > { %v732_v35 = vadd.f32 %v731_v31, %v730_v21  ;;  %v845_v21 = vperm.slane %v841_v8, 2 }
 0x1d8   : > { %v733_v43 = vrot.slane %v732_v35, 2 }
 0x1da   : > { %v734_v46 = vadd.f32 %v733_v43, %v732_v35 }
 0x1dc   : > { %v735_v26 = vrot.slane %v734_v46, 1 }
 0x1de   : > { %v736_v39 = vadd.f32 %v735_v26, %v734_v46 }
 0x1e0   : > { %v738_v49 = vmul.f32 %v737_v52, %v736_v39 }
 0x1e2   : > { %v740_v53 = vadd.f32 %v739_v40, %v738_v49 }
 0x1e4   : > { %v741_v54 = vmax.f32 %v740_v53, 0.0 }
 0x1e6   : > { %1194 = vmatmul.msk.f32.vlgmr.msra.gmra.mxu0 %vm723_vm4, %v741_v54  ;;  %1195 = vmatmul.msk.f32.vlgmr.msra.gmra.mxu1 %vm723_vm4, %v741_v54 }
 0x1e7   : > { %1196 = vmatmul.msk.f32.vlgmr.msra.gmra.mxu2 %vm723_vm4, %v741_v54  ;;  %1197 = vmatmul.msk.f32.vlgmr.msra.gmra.mxu3 %vm723_vm4, %v741_v54 }
 0x263   : > { %v778_v0 = vpop.f32.mrf.mxu0  ;;  %v798_v14 = vpop.f32.mrf.mxu1 }
 0x264   : > { %v851_v15 = vmul.f32 %v843_v10, %v778_v0  ;;  %v852_v18 = vmul.f32 %v844_v11, %v798_v14 }
 0x266   : > { %v865_v19 = vadd.f32 %v857_v12, %v851_v15  ;;  %v866_v20 = vadd.f32 %v858_v13, %v852_v18 }
 0x268   : > { %949 = vmatmul.f32.vlgmr.msrb.gmra.mxu0 %v865_v19  ;;  %969 = vmatmul.f32.vlgmr.msrb.gmra.mxu1 %v866_v20 }
 0x26a   : > { %v818_v30 = vpop.f32.mrf.mxu2  ;;  %v838_v31 = vpop.f32.mrf.mxu3 }
 0x26b   : > { %v853_v16 = vmul.f32 %v845_v21, %v818_v30  ;;  %v854_v32 = vmul.f32 %v846_v22, %v838_v31 }
 0x26d   : > { %v867_v33 = vadd.f32 %v859_v23, %v853_v16  ;;  %v868_v34 = vadd.f32 %v860_v25, %v854_v32 }
 0x26f   : > { %989 = vmatmul.f32.vlgmr.msrb.gmra.mxu2 %v867_v33  ;;  %1009 = vmatmul.f32.vlgmr.msrb.gmra.mxu3 %v868_v34 }
 0x270   : > { %1398 = shalt.err (!%p1395_p9)
}
 0x271   : > { %s1502_s28 = smov 256   ;;  %s1503_s11 = smov 16  }
 0x272   : > { %1213 = dma.vmem_to_hbm [thread:$0]  (%p1599_p4), %s1034_s27, 1024, %s1036_s19, %s1015_s29, %s1502_s28, %s1502_s28, %s1503_s11  }
 0x273   : > { %s1047_s17 = scalar_lea.hbm %s1857_s10, %s1481_s16  ;;  %s421_s0 = scalar_lea.vmem [#allocation9], %s1702_s12 }
 0x274   : > { %s1049_s30 = sshll.u32 %s421_s0, 4  ;;  %s1051_s5 = sshll.u32 %s1047_s17, 4  ;;  %s1050_s30 = int_to_ptr.vmem [resolvable:$true] %s1049_s30  ;;  %s1052_s5 = int_to_ptr.hbm [resolvable:$true] %s1051_s5 }
 0x275   : > { %s1020_s21 = scalar_lea.sflag [#allocation10], %s1702_s12  ;;  %s1413_s27 = sshra.s32 %s1052_s5, 4  ;;  %s1414_s27 = int_to_ptr.hbm [resolvable:$true] %s1413_s27 }
 0x276   : > { %s1415_s19 = scalar_lea.hbm %s1414_s27, 1  ;;  %s1419_s22 = scalar_lea.hbm %s1857_s10, 2 }
 0x277   : > { %p1416_p10 = scmp.ne.s32.totalorder %s1414_s27, %s1415_s19  ;;  %p1420_p13 = scmp.lt.s32.totalorder %s1414_s27, %s1857_s10 }
 0x278   : > { %p1421_p0 = scmp.lt.s32.totalorder %s1419_s22, %s1415_s19 }
 0x279   : > { %p1417_p11 = pnand %p1416_p10, %p1599_p4 }
 0x27a   : > { %p1422_p1 = por %p1421_p0, %p1420_p13 }
 0x27b   : > { %p1418_p12 = pneg %p1417_p11 }
 0x27d   : > { %p1423_p2 = pnand %p1422_p1, %p1418_p12 }
 0x2e5   : > { %v950_v35 = vpop.f32.mrf.mxu0  ;;  %v970_v36 = vpop.f32.mrf.mxu1 }
 0x2e6   : > { %v971_v37 = vadd.f32 %v970_v36, %v950_v35 }
 0x2f2   : > { %v990_v24 = vpop.f32.mrf.mxu2  ;;  %v1010_v43 = vpop.f32.mrf.mxu3 }
 0x2f3   : > { %v991_v38 = vadd.f32 %v990_v24, %v971_v37 }
 0x2f5   : > { %v1011_v28 = vadd.f32 %v1010_v43, %v991_v38 }
 0x2f7   : > { %1013 = vst [vmem:[%s421_s0] sm:$0x1] %v1011_v28 }
 0x2f8   : > { %1426 = shalt.err (!%p1423_p2)
}
 0x2f9   : > { %1214 = dma.vmem_to_hbm [thread:$0]  (%p1599_p4), %s1050_s30, 16, %s1052_s5, %s1020_s21  }
 0x2fa PF: > { %p1235_p3 = scmp.ge.s32.totalorder %s1489_s18, 2  ;;  %s1063_s12 = sand.u32 1, %s1469_s13  }
 0x2fb   : > { %s1064_s11 = scalar_lea.sflag [#allocation5], %s1063_s12 }
 0x2fc   : > { %p1225_p5 = pnand %p1235_p3, %p1606_p8 }
 0x2fe   : > { %p1226_p6 = pneg %p1225_p5 }
 0x300   : > { %1460 = dma.done.wait (%p1226_p6), %s1064_s11, 1024  }
 0x301   : > { %1462 = vsyncadd (%p1226_p6), %s1064_s11, 4294966272  ;;  %s1074_s20 = scalar_lea.sflag [#allocation10], %s1063_s12 }
 0x302   : > { %1464 = dma.done.wait (%p1226_p6), %s1074_s20, 16  }
 0x303   : > { %1466 = vsyncadd (%p1226_p6), %s1074_s20, 4294967280  ;;  %s29_s18 = sadd.s32 1, %s1489_s18   ;;  %s1871_s23 = sld [smem:[#allocation17_spill]] }
 0x304   : > { %p26_p7 = scmp.ge.s32.totalorder %s29_s18, 4   ;;  %s1872_s16 = sld [smem:[#allocation15_spill]] }
 0x305   : > { %s1873_s17 = sld [smem:[#allocation16_spill]]  ;;  %s1874_s13 = smov %s1473_s14 }
 0x306   : > { %s1875_s14 = smov %s1477_s15  ;;  %28 = sbr.rel (!%p26_p7) target bundleno = 11 (0xb), region = 125 }
 0x309   : > { %s1876_s15 = smov %s1871_s23 }
 0x30b   :  { %1079 = vsyncpa [#allocation4], 1 }
 0x30c   :  { %1081 = vsyncpa [#allocation4 + $0x1], 1 }
 0x30d   :  { %1082 = vsyncpa [#allocation7], 1 }
 0x30e   :  { %1083 = vsyncpa [#allocation5], 1 }
 0x30f   :  { %1085 = vsyncpa [#allocation5 + $0x1], 1 }
 0x310   :  { %1086 = vsyncpa [#allocation10], 1 }
 0x311   :  { %1088 = vsyncpa [#allocation10 + $0x1], 1 }

</bundles_post_ra>
